<compile_context>
chip_gen: v7x
topology: tpu7x:2x2x1
jax: 0.10.0
libtpu: 0.0.40
codegen_flags: <defaults>
</compile_context>

<pallas_src>
import functools

import jax
import jax.numpy as jnp
from jax.experimental import pallas as pl
from jax.experimental.pallas import tpu as pltpu

_LANE = 128
_SUBLANE = 8

# Dispatch / VMEM knobs.
_GRIDLESS_MAX_BATCH = 256               # below this: one gridless fused call
_VMEM_TILE_BUDGET = 24 * 1024 * 1024    # per-tile budget; safe on v7x (64 MiB)
_VMEM_LIMIT_BYTES = 40 * 1024 * 1024    # raised scoped limit for large tiles
                                        # (still < v7x's 64 MiB physical VMEM)


def _round_up(n: int, m: int) -> int:
    return ((n + m - 1) // m) * m


# ----------------------------------------------------------------------------
# Fused kernel:  o = (...relu(relu(x@W1+b1)@W2+b2)...)@Wn + bn
# refs = (x_ref, W1, b1, W2, b2, ..., Wn, bn, o_ref), all VMEM-resident.
#   x_ref: (B, IN_pad) bf16    Wi: (IN_i, OUT_i) bf16    bi: (1, OUT_i) f32
#   o_ref: (B, OUT_pad) f32
# Matmuls run in bf16 on the MXU with f32 accumulation; bias/ReLU stay f32.
# ----------------------------------------------------------------------------
def _fcnn_fused_kernel(*refs, num_layers: int):
    x_ref = refs[0]
    o_ref = refs[-1]
    wb = refs[1:-1]

    h = x_ref[...]  # bf16
    for i in range(num_layers):
        w = wb[2 * i][...]        # bf16
        b = wb[2 * i + 1][...]    # f32 (1, OUT_i)
        h = jnp.dot(h.astype(jnp.bfloat16), w,
                    preferred_element_type=jnp.float32) + b
        if i < num_layers - 1:
            h = jnp.maximum(h, 0.0)   # ReLU (Dropout is identity in eval mode)
    o_ref[...] = h.astype(o_ref.dtype)


def _fcnn_call_gridless(x2, flat_params, out_pad, num_layers):
    """Single gridless pallas_call: everything lives in VMEM, kernel runs once."""
    batch = x2.shape[0]
    kernel = functools.partial(_fcnn_fused_kernel, num_layers=num_layers)
    n_in = 1 + len(flat_params)
    return pl.pallas_call(
        kernel,
        out_shape=jax.ShapeDtypeStruct((batch, out_pad), jnp.float32),
        in_specs=[pl.BlockSpec(memory_space=pltpu.MemorySpace.VMEM)] * n_in,
        out_specs=pl.BlockSpec(memory_space=pltpu.MemorySpace.VMEM),
    )(x2, *flat_params)


def _fcnn_call_batched(x2, flat_params, out_pad, num_layers, batch_tile):
    """Weight-stationary batch-tiled path for large batches.

    Only the batch axis is tiled ("parallel" -> shards across TensorCores on
    v7x); every W/b keeps index_map (0, 0) so weights stay VMEM-resident
    (revisited blocks are not re-DMA'd).
    """
    batch, in_pad = x2.shape
    padded_batch = _round_up(batch, batch_tile)
    if padded_batch != batch:
        x2 = jnp.pad(x2, ((0, padded_batch - batch), (0, 0)))

    kernel = functools.partial(_fcnn_fused_kernel, num_layers=num_layers)
    w_specs = [pl.BlockSpec(p.shape, lambda i: (0, 0)) for p in flat_params]

    out = pl.pallas_call(
        kernel,
        out_shape=jax.ShapeDtypeStruct((padded_batch, out_pad), jnp.float32),
        grid_spec=pltpu.PrefetchScalarGridSpec(
            num_scalar_prefetch=0,
            grid=(padded_batch // batch_tile,),
            in_specs=[pl.BlockSpec((batch_tile, in_pad), lambda i: (i, 0))]
                     + w_specs,
            out_specs=pl.BlockSpec((batch_tile, out_pad), lambda i: (i, 0)),
        ),
        compiler_params=pltpu.CompilerParams(
            dimension_semantics=("parallel",),
            vmem_limit_bytes=_VMEM_LIMIT_BYTES,
        ),
    )(x2, *flat_params)
    return out  # padded; caller slices once


def _pick_batch_tile(batch, in_pad, out_pad, layer_dims, weight_bytes):
    """Adaptive tile: even tile count (v7x 2-TC), rows multiple of 8, and the
    per-tile VMEM footprint (double-buffered x/out + live f32 intermediates +
    weights) under the budget."""
    max_inter = max([_round_up(d, _LANE) for d in layer_dims] + [out_pad])
    per_row = (2 * in_pad * 2          # x tile, bf16, double-buffered
               + 2 * out_pad * 4       # out tile, f32, double-buffered
               + 2 * max_inter * 4)    # live f32 intermediates (scratch)
    budget = max(_VMEM_TILE_BUDGET - 2 * weight_bytes, per_row * _SUBLANE)
    max_tile = max(_SUBLANE, (budget // per_row) // _SUBLANE * _SUBLANE)

    n_tiles = 2                         # even -> both v7x TensorCores get work
    tile = _round_up(pl.cdiv(batch, n_tiles), _SUBLANE)
    while tile > max_tile:
        n_tiles += 2
        tile = _round_up(pl.cdiv(batch, n_tiles), _SUBLANE)
    return tile


def fcnn_forward(x, params, *, batch_tile=None):
    """Forward pass of FCNNModel: flatten + fused Pallas MLP.

    params: list of (W, b) with W shaped (in_features, out_features), so the
    kernel computes y = x @ W + b (PyTorch nn.Linear weight transposed).
    """
    # x.view(x.size(0), -1)
    x2 = x.reshape(x.shape[0], -1)
    batch, in_dim = x2.shape
    num_layers = len(params)
    layer_dims = [w.shape[1] for (w, _) in params]
    out_dim = layer_dims[-1]
    out_pad = _round_up(out_dim, _LANE)
    in_pad = _round_up(in_dim, _LANE)

    # bf16 input, K padded to 128 (zero columns contribute nothing).
    x2 = x2.astype(jnp.bfloat16)
    if in_pad != in_dim:
        x2 = jnp.pad(x2, ((0, 0), (0, in_pad - in_dim)))

    # bf16 weights (padded first-layer rows / last-layer cols), f32 biases.
    flat = []
    weight_bytes = 0
    for i, (w, b) in enumerate(params):
        w = w.astype(jnp.bfloat16)
        b = b.astype(jnp.float32)
        if i == 0 and in_pad != in_dim:
            w = jnp.pad(w, ((0, in_pad - in_dim), (0, 0)))
        if i == num_layers - 1 and out_pad != out_dim:
            w = jnp.pad(w, ((0, 0), (0, out_pad - out_dim)))
            b = jnp.pad(b, (0, out_pad - out_dim))
        flat.append(w)
        flat.append(b.reshape(1, -1))
        weight_bytes += w.size * 2 + b.size * 4

    if batch < _GRIDLESS_MAX_BATCH:
        out = _fcnn_call_gridless(x2, flat, out_pad, num_layers)
    else:
        if batch_tile is None:
            batch_tile = _pick_batch_tile(batch, in_pad, out_pad,
                                          layer_dims, weight_bytes)
        out = _fcnn_call_batched(x2, flat, out_pad, num_layers, batch_tile)

    # Single fused slice (batch padding + lane padding) -> one output copy.
    return out[:batch, :out_dim]


def init_fcnn_params(key, input_size, output_size, hidden_sizes, dtype=jnp.float32):
    """Deterministic synthetic init matching the nn.Linear shapes of FCNNModel."""
    params = []
    in_size = input_size
    dims = list(hidden_sizes) + [output_size]
    for h in dims:
        key, kw, kb = jax.random.split(key, 3)
        scale = 1.0 / jnp.sqrt(jnp.asarray(in_size, dtype))
        w = jax.random.uniform(kw, (in_size, h), dtype, -scale, scale)
        b = jax.random.uniform(kb, (h,), dtype, -scale, scale)
        params.append((w, b))
        in_size = h
    return params


def fcnn_reference_f32(x, params):
    """Pure-JAX f32 reference (original module math, HIGHEST precision)."""
    x = x.reshape(x.shape[0], -1)
    n = len(params)
    for i, (w, b) in enumerate(params):
        x = jnp.dot(x, w, precision=jax.lax.Precision.HIGHEST) + b
        if i < n - 1:
            x = jnp.maximum(x, 0.0)
    return x


def fcnn_reference_bf16(x, params):
    """Pure-JAX reference emulating the kernel's bf16-operand / f32-accumulate
    matmuls (bias-add and ReLU in f32)."""
    h = x.reshape(x.shape[0], -1).astype(jnp.bfloat16)
    n = len(params)
    for i, (w, b) in enumerate(params):
        h = jnp.dot(h.astype(jnp.bfloat16), w.astype(jnp.bfloat16),
                    preferred_element_type=jnp.float32) + b.astype(jnp.float32)
        if i < n - 1:
            h = jnp.maximum(h, 0.0)
    return h


if __name__ == "__main__":
    # Small shapes consistent with the module: 3D joints -> SMPL-X params.
    batch = 8
    num_joints = 25               # input is (batch, num_joints, 3)
    input_size = num_joints * 3   # 75
    hidden_sizes = [64, 32]
    output_size = 66
    dropout = 0.1                 # identity in inference forward

    key = jax.random.PRNGKey(0)
    key, kx, kx_big = jax.random.split(key, 3)
    x = jax.random.normal(kx, (batch, num_joints, 3), dtype=jnp.float32)
    params = init_fcnn_params(key, input_size, output_size, hidden_sizes)

    fwd = jax.jit(fcnn_forward)

    # Small batch -> single fused gridless call.
    out = jax.block_until_ready(fwd(x, params))
    assert out.shape == (batch, output_size), out.shape
    ref_bf16 = fcnn_reference_bf16(x, params)
    ref_f32 = fcnn_reference_f32(x, params)
    assert jnp.allclose(out, ref_bf16, rtol=2e-3, atol=2e-3), "small-batch mismatch (bf16 ref)"
    assert jnp.allclose(out, ref_f32, rtol=1e-1, atol=1e-1), "small-batch mismatch (f32 sanity)"

    # Large batch -> weight-stationary, adaptively tiled, even-grid (parallel) path.
    big_batch = 1024
    x_big = jax.random.normal(kx_big, (big_batch, num_joints, 3), dtype=jnp.float32)
    out_big = jax.block_until_ready(fwd(x_big, params))
    assert out_big.shape == (big_batch, output_size), out_big.shape
    ref_big = fcnn_reference_bf16(x_big, params)
    assert jnp.allclose(out_big, ref_big, rtol=2e-3, atol=2e-3), "big-batch mismatch"

    print("KERNEL_OK")
</pallas_src>

<mosaic_0001>
module attributes {stable_mosaic.version = 11 : i64} {
  func.func @_fcnn_fused_kernel(%arg0: memref<8x128xbf16, #tpu.memory_space<vmem>>, %arg1: memref<128x64xbf16, #tpu.memory_space<vmem>>, %arg2: memref<1x64xf32, #tpu.memory_space<vmem>>, %arg3: memref<64x32xbf16, #tpu.memory_space<vmem>>, %arg4: memref<1x32xf32, #tpu.memory_space<vmem>>, %arg5: memref<32x128xbf16, #tpu.memory_space<vmem>>, %arg6: memref<1x128xf32, #tpu.memory_space<vmem>>, %arg7: memref<8x128xf32, #tpu.memory_space<vmem>>) attributes {dimension_semantics = [], scalar_prefetch = 0 : i64, scratch_operands = 0 : i64, tpu.core_type = #tpu.core_type<tc>} {
    %c0 = arith.constant 0 : index
    %c0_0 = arith.constant 0 : index
    %0 = vector.load %arg0[%c0, %c0_0] : memref<8x128xbf16, #tpu.memory_space<vmem>>, vector<8x128xbf16>
    %c0_1 = arith.constant 0 : index
    %c0_2 = arith.constant 0 : index
    %1 = vector.load %arg1[%c0_1, %c0_2] : memref<128x64xbf16, #tpu.memory_space<vmem>>, vector<128x64xbf16>
    %c0_3 = arith.constant 0 : index
    %c0_4 = arith.constant 0 : index
    %2 = vector.load %arg2[%c0_3, %c0_4] : memref<1x64xf32, #tpu.memory_space<vmem>>, vector<1x64xf32>
    %cst = arith.constant dense<0.000000e+00> : vector<8x64xf32>
    %3 = tpu.matmul %0, %1, %cst {dimension_numbers = #tpu.dot_dimension_numbers<[1], [0], [0], [1], [0, 0, 1, 1], [], []>} : vector<8x128xbf16>, vector<128x64xbf16>, vector<8x64xf32> -> vector<8x64xf32>
    %4 = vector.broadcast %2 : vector<1x64xf32> to vector<8x64xf32>
    %5 = arith.addf %3, %4 : vector<8x64xf32>
    %cst_5 = arith.constant 0.000000e+00 : f32
    %6 = vector.broadcast %cst_5 : f32 to vector<8x64xf32>
    %7 = arith.maximumf %5, %6 : vector<8x64xf32>
    %c0_6 = arith.constant 0 : index
    %c0_7 = arith.constant 0 : index
    %8 = vector.load %arg3[%c0_6, %c0_7] : memref<64x32xbf16, #tpu.memory_space<vmem>>, vector<64x32xbf16>
    %c0_8 = arith.constant 0 : index
    %c0_9 = arith.constant 0 : index
    %9 = vector.load %arg4[%c0_8, %c0_9] : memref<1x32xf32, #tpu.memory_space<vmem>>, vector<1x32xf32>
    %10 = arith.truncf %7 : vector<8x64xf32> to vector<8x64xbf16>
    %cst_10 = arith.constant dense<0.000000e+00> : vector<8x32xf32>
    %11 = tpu.matmul %10, %8, %cst_10 {dimension_numbers = #tpu.dot_dimension_numbers<[1], [0], [0], [1], [0, 0, 1, 1], [], []>} : vector<8x64xbf16>, vector<64x32xbf16>, vector<8x32xf32> -> vector<8x32xf32>
    %12 = vector.broadcast %9 : vector<1x32xf32> to vector<8x32xf32>
    %13 = arith.addf %11, %12 : vector<8x32xf32>
    %cst_11 = arith.constant 0.000000e+00 : f32
    %14 = vector.broadcast %cst_11 : f32 to vector<8x32xf32>
    %15 = arith.maximumf %13, %14 : vector<8x32xf32>
    %c0_12 = arith.constant 0 : index
    %c0_13 = arith.constant 0 : index
    %16 = vector.load %arg5[%c0_12, %c0_13] : memref<32x128xbf16, #tpu.memory_space<vmem>>, vector<32x128xbf16>
    %c0_14 = arith.constant 0 : index
    %c0_15 = arith.constant 0 : index
    %17 = vector.load %arg6[%c0_14, %c0_15] : memref<1x128xf32, #tpu.memory_space<vmem>>, vector<1x128xf32>
    %18 = arith.truncf %15 : vector<8x32xf32> to vector<8x32xbf16>
    %cst_16 = arith.constant dense<0.000000e+00> : vector<8x128xf32>
    %19 = tpu.matmul %18, %16, %cst_16 {dimension_numbers = #tpu.dot_dimension_numbers<[1], [0], [0], [1], [0, 0, 1, 1], [], []>} : vector<8x32xbf16>, vector<32x128xbf16>, vector<8x128xf32> -> vector<8x128xf32>
    %20 = vector.broadcast %17 : vector<1x128xf32> to vector<8x128xf32>
    %21 = arith.addf %19, %20 : vector<8x128xf32>
    %c0_17 = arith.constant 0 : index
    %c0_18 = arith.constant 0 : index
    %22 = vector.load %arg7[%c0_17, %c0_18] : memref<8x128xf32, #tpu.memory_space<vmem>>, vector<8x128xf32>
    tpu.vector_store %arg7[%c0_17, %c0_18], %21 {strides = array<i32>} : memref<8x128xf32, #tpu.memory_space<vmem>>, vector<8x128xf32>,
    return
  }
}

</mosaic_0001>

<bundles_post_ra>
// kernel: fcnn_forward.1
= control target key start
LH: loop header
LB: loop body
LE: loop exit
PB: predicated region body
PF: predicated region fallthrough
CT: control target
= control target key end

     0   :  { %v426_v1 = vmov 0.0   ;;  %vm427_vm0 = vmmov 0   ;;  %s538_s0 = inlined_call_operand.vmem [shape: bf16[8,128], index: 0, kind: input, shape index: {}]   ;;  %s539_s1 = inlined_call_operand.vmem [shape: bf16[128,64], index: 1, kind: input, shape index: {}]   ;;  %s540_s2 = inlined_call_operand.vmem [shape: f32[1,64], index: 2, kind: input, shape index: {}]   ;;  %s541_s3 = inlined_call_operand.vmem [shape: bf16[64,32], index: 3, kind: input, shape index: {}]   ;;  %s542_s4 = inlined_call_operand.vmem [shape: f32[1,32], index: 4, kind: input, shape index: {}]   ;;  %s543_s5 = inlined_call_operand.vmem [shape: bf16[32,128], index: 5, kind: input, shape index: {}]   ;;  %s544_s6 = inlined_call_operand.vmem [shape: f32[1,128], index: 6, kind: input, shape index: {}]   ;;  %s545_s7 = inlined_call_operand.hbm [shape: f32[8,128], index: 7, kind: output, shape index: {}]  }
   0x1   :  { %v388_v0 = vld [vmem:[%s539_s1] sm:$0xff]   ;;  %345 = vmatprep.subr.bf16.mxu0 %v426_v1  ;;  %365 = vmatprep.subr.bf16.mxu1 %v426_v1  ;;  %v389_v2 = vld [vmem:[%s539_s1 + $0x8] sm:$0xff]   ;;  %v390_v3 = vld [vmem:[%s539_s1 + $0x10] sm:$0xff]  }
   0x2   :  { %346 = vmatpush3.bf16.msra.mxu0 %v388_v0  ;;  %361 = vmatprep.mubr.msk.bf16.mxu0 %vm427_vm0, %v426_v1  ;;  %v396_v4 = vld [vmem:[%s541_s3] sm:$0xff]   ;;  %v391_v5 = vld [vmem:[%s539_s1 + $0x18] sm:$0xff]   ;;  %v397_v6 = vld [vmem:[%s541_s3 + $0x8] sm:$0xff]  }
   0x3   :  { %347 = vmatprep.subr.bf16.mxu0 %v426_v1  ;;  %373 = vmatprep.mubr.msk.bf16.mxu1 %vm427_vm0, %v426_v1 }
   0x4   :  { %366 = vmatpush3.bf16.msra.mxu1 %v396_v4 }
   0x5   :  { %367 = vmatprep.subr.bf16.mxu1 %v426_v1 }
   0x6   :  { %348 = vmatpush3.bf16.msra.mxu0 %v389_v2 }
   0x7   :  { %349 = vmatprep.subr.bf16.mxu0 %v426_v1 }
   0xa   :  { %350 = vmatpush3.bf16.msra.mxu0 %v390_v3 }
   0xb   :  { %351 = vmatprep.subr.bf16.mxu0 %v426_v1 }
   0xc   :  { %12 = vsyncpa [#allocation3], 0  ;;  %v392_v7 = vld [vmem:[%s539_s1 + $0x20] sm:$0xff]   ;;  %368 = vmatpush3.bf16.msra.mxu1 %v397_v6  ;;  %v393_v8 = vld [vmem:[%s539_s1 + $0x28] sm:$0xff]   ;;  %vm181_vm1 = vcmask 523264   ;;  %vm250_vm2 = vcmask 261120  }
   0xd   :  { %369 = vmatprep.subr.bf16.mxu1 %v426_v1  ;;  %v394_v9 = vld [vmem:[%s539_s1 + $0x30] sm:$0xff]   ;;  %v395_v10 = vld [vmem:[%s539_s1 + $0x38] sm:$0xff]   ;;  %v28_v11 = vld [vmem:[%s538_s0] sm:$0xf]  ;;  %s428_s10 = smov [#allocation2]  }
   0xe   :  { %352 = vmatpush3.bf16.msra.mxu0 %v391_v5  ;;  %v398_v12 = vld [vmem:[%s541_s3 + $0x10] sm:$0xff]   ;;  %v399_v13 = vld [vmem:[%s541_s3 + $0x18] sm:$0xff]   ;;  %v309_v14 = vld [vmem:[%s540_s2] ss:$0 sm:$0xff] }
   0xf   :  { %353 = vmatprep.subr.bf16.mxu0 %v426_v1  ;;  %v400_v21 = vld [vmem:[%s543_s5] sm:$0xff]   ;;  %v401_v23 = vld [vmem:[%s543_s5 + $0x8] sm:$0xff]   ;;  %s301_s5 = sshll.u32 %s428_s10, 4  ;;  %s302_s5 = int_to_ptr.vmem [resolvable:$true] %s301_s5 }
  0x10   :  { %370 = vmatpush3.bf16.msra.mxu1 %v398_v12  ;;  %v318_v24 = vld [vmem:[%s542_s4] ss:$0 sm:$0xff]  ;;  %s402_s4 = scalar_lea.vmem %s302_s5, 128  ;;  %p407_p1 = scmp.lt.s32.totalorder %s302_s5, %s302_s5 }
  0x11   :  { %371 = vmatprep.subr.bf16.mxu1 %v426_v1  ;;  %v324_v32 = vld [vmem:[%s544_s6] ss:$0 sm:$0xff]  ;;  %p403_p0 = scmp.ne.s32.totalorder %s302_s5, %s402_s4  ;;  %p408_p2 = scmp.lt.s32.totalorder %s402_s4, %s402_s4 }
  0x12   :  { %354 = vmatpush3.bf16.msra.mxu0 %v392_v7 }
  0x13   :  { %355 = vmatprep.subr.bf16.mxu0 %v426_v1  ;;  %p409_p3 = por %p408_p2, %p407_p1 }
  0x14   :  { %372 = vmatpush3.bf16.msra.mxu1 %v399_v13 }
  0x15   :  { %377 = vmatprep.subr.bf16.mxu1 %v426_v1  ;;  %p410_p4 = pnand %p409_p3, %p403_p0 }
  0x16   :  { %356 = vmatpush3.bf16.msra.mxu0 %v393_v8 }
  0x17   :  { %357 = vmatprep.subr.bf16.mxu0 %v426_v1 }
  0x1a   :  { %358 = vmatpush3.bf16.msra.mxu0 %v394_v9 }
  0x1b   :  { %359 = vmatprep.subr.bf16.mxu0 %v426_v1 }
  0x1e   :  { %360 = vmatpush3.bf16.msra.mxu0 %v395_v10 }
  0x21   :  { %362 = vmatmul.mubr.bf16.vlgmr.msra.gmra.mrb[0].mxu0 %v28_v11 }
  0xf4   :  { %v134_v15 = vpop.f32.mrb[0].mxu0 }
  0xf5   :  { %v135_v16 = vadd.f32 %v309_v14, %v134_v15  ;;  %v363_v17 = vpop.f32.mrb[1].mxu0 }
  0xf6   :  { %v137_v18 = vpop.f32.mrb[2].mxu0 }
  0xf7   :  { %v140_v19 = vmax.f32 %v135_v16, 0.0  ;;  %v364_v20 = vpop.f32.mrb[3].mxu0 }
  0xf9   :  { %v150_v22 = vpack.c.bf16 %v140_v19, %v140_v19 }
  0xfb   :  { %374 = vmatmul.mubr.msk.bf16.vlgmr.msra.gmra.mrb[0].mxu1 %vm181_vm1, %v150_v22 }
  0xfc   :  { %378 = vmatpush3.bf16.msra.mxu1 %v400_v21  ;;  %381 = vmatprep.mubr.msk.bf16.mxu1 %vm427_vm0, %v426_v1 }
  0xfd   :  { %379 = vmatprep.subr.bf16.mxu1 %v426_v1 }
 0x100   :  { %380 = vmatpush3.bf16.msra.mxu1 %v401_v23 }
 0x1ce   :  { %v219_v25 = vpop.f32.mrb[0].mxu1 }
 0x1cf   :  { %v220_v26 = vadd.f32 %v318_v24, %v219_v25  ;;  %v375_v27 = vpop.f32.mrb[1].mxu1 }
 0x1d0   :  { %v222_v28 = vpop.f32.mrb[2].mxu1 }
 0x1d1   :  { %v225_v29 = vmax.f32 %v220_v26, 0.0  ;;  %v376_v30 = vpop.f32.mrb[3].mxu1 }
 0x1d3   :  { %v231_v31 = vpack.c.bf16 %v225_v29, %v225_v29 }
 0x1d5   :  { %382 = vmatmul.mubr.msk.bf16.vlgmr.msra.gmra.mrb[4].mxu1 %vm250_vm2, %v231_v31 }
 0x2a8   :  { %v288_v33 = vpop.f32.mrb[4].mxu1 }
 0x2a9   :  { %v289_v34 = vadd.f32 %v324_v32, %v288_v33  ;;  %v383_v35 = vpop.f32.mrb[5].mxu1 }
 0x2aa   :  { %v291_v36 = vpop.f32.mrb[6].mxu1 }
 0x2ab   :  { %294 = vst [vmem:[#allocation2] sm:$0xff] %v289_v34  ;;  %v384_v37 = vpop.f32.mrb[7].mxu1 }
 0x2ac   :  { %413 = shalt.err (!%p410_p4)
}
 0x2ad   :  { %s414_s6 = scalar_lea.hbm %s545_s7, 128 }
 0x2ae   :  { %p415_p5 = scmp.ne.s32.totalorder %s545_s7, %s414_s6  ;;  %p418_p6 = scmp.lt.u32.totalorder %s414_s6, %s545_s7 }
 0x2b0   :  { %p420_p7 = pnand %p418_p6, %p415_p5 }
 0x2b2   :  { %423 = shalt.err (!%p420_p7)
}
 0x2b3   :  { %304 = dma.vmem_to_hbm [thread:$0]  %s302_s5, 128, %s545_s7, [#allocation3]  }
 0x2b4   :  { %424 = dma.done.wait [#allocation3], 128  }
 0x2b5   :  { %425 = vsyncadd [#allocation3], 4294967168 }
 0x2b6   :  { %308 = vsyncpa [#allocation3], 1 }

</bundles_post_ra>
